<compile_context>
chip_gen: v6e
topology: v6e:2x2x1
jax: 0.10.0
libtpu: 0.0.40
codegen_flags: <defaults>
</compile_context>

<pallas_src>
import functools

import jax
import jax.numpy as jnp
from jax.experimental import pallas as pl
from jax.experimental.pallas import tpu as pltpu


def _tv_kernel(x_ref, wm_ref, sel_ref, sub_ref, o_ref, *,
               img_w, pack_k, rows_per_img):
    """One block of packed rows.

    x_ref   : (tile_rows, lanes) input block, lanes = pack_k * img_w.
    wm_ref  : (1, lanes) f32; zero on the last column of every image row (and
              the roll wrap), elsewhere count_h/count_w (merges both sums).
    sel_ref : (1, lanes) f32 0/1; 1 where the height neighbour lives in the
              same packed row (lane < (pack_k-1)*img_w).
    sub_ref : (tile_rows, 1) f32 0/1; zero on image-last and block-last packed
              rows (block seams are re-added in the wrapper).
    o_ref   : (1, 1) SMEM partial sum for this grid step.
    """
    x = x_ref[...]
    tp, lanes = x.shape
    xf = x.astype(jnp.float32)

    # ---- width-direction differences: neighbour at lane + 1 -----------------
    nxt = pltpu.roll(x, lanes - 1, axis=1)               # nxt[p, l] = x[p, l+1]
    dw = nxt.astype(jnp.float32) - xf
    acc = dw * dw * wm_ref[...]

    # ---- height-direction differences ---------------------------------------
    d1 = None
    nxt1 = None
    if pack_k > 1:
        # next image row sits img_w lanes further in the same packed row
        nxt1 = pltpu.roll(x, lanes - img_w, axis=1)       # x[p, l + img_w]
        d1 = nxt1.astype(jnp.float32) - xf                # valid: lane < (pack_k-1)*img_w
    d2v = None
    if rows_per_img > 1:
        # last packed slot of a row -> first slot of the next packed row.
        # Reuse nxt1: on the lanes that survive the select below it already
        # wraps to x[p, l-(pack_k-1)*img_w], so one sublane roll gives
        # x[p+1, l-(pack_k-1)*img_w]  (3 XLU passes total instead of 4).
        base = nxt1 if pack_k > 1 else x
        nxt2 = pltpu.roll(base, tp - 1, axis=0)           # row p+1 (wrap row is masked)
        d2v = (nxt2.astype(jnp.float32) - xf) * sub_ref[...]

    if d1 is not None and d2v is not None:
        dh = jnp.where(sel_ref[...] != 0.0, d1, d2v)
    elif d1 is not None:
        dh = jnp.where(sel_ref[...] != 0.0, d1, 0.0)
    else:
        dh = d2v

    if dh is not None:
        acc = acc + dh * dh
    o_ref[0, 0] = jnp.sum(acc)


def _largest_divisor_leq(n, cap):
    cap = max(1, min(n, cap))
    for d in range(cap, 0, -1):
        if n % d == 0:
            return d
    return 1


def tv_loss(x, tv_loss_weight=2e-08, *, target_block_bytes=16 * 1024 * 1024):
    """Total-variation loss matching PyTorch TVLoss.forward semantics."""
    n, c, h, w = x.shape
    num_images = n * c
    itemsize = jnp.dtype(x.dtype).itemsize

    # Lane-dense packing: pack_k image rows per packed row when W is narrow.
    pack_k = 1 if w >= 128 else _largest_divisor_leq(h, max(1, 256 // w))
    lanes = pack_k * w
    rows_per_img = h // pack_k
    p_rows = num_images * rows_per_img
    a = x.reshape(p_rows, lanes)                      # free row-major reshape

    # ---- block (tile_rows) selection, VMEM-budget aware ---------------------
    vmem_cap = 64 << 20                               # assume v7x-sized VMEM if unknown
    try:
        vmem_cap = int(getattr(pltpu.get_tpu_info(), "vmem_capacity_bytes", vmem_cap))
    except Exception:
        pass
    # Per packed row: double-buffered input block + ~5 block-sized f32
    # temporaries (cast / roll / diff / square) that Mosaic materialises.
    per_row_vmem = lanes * (2 * itemsize + 5 * 4)
    budget_rows = min(max(1, target_block_bytes // (lanes * itemsize)),
                      max(1, (vmem_cap - (8 << 20)) // per_row_vmem))

    sub_pack = max(8, 32 // max(1, itemsize))         # f32: 8, bf16: 16, int8/fp8: 32
    tile_rows = None
    for sp in (sub_pack, 8):
        cands = [t for t in range(sp, min(p_rows, budget_rows) + 1, sp)
                 if p_rows % t == 0]
        if cands:
            multi = [t for t in cands if p_rows // t >= 2]  # >=2 blocks -> both v7x TCs
            tile_rows = max(multi) if multi else max(cands)
            break
    if tile_rows is None:
        # TODO(synk): pad p_rows to a multiple of 8 for odd shapes instead of a
        # single full-extent block.
        tile_rows = 8 if (p_rows >= 8 and p_rows % 8 == 0) else p_rows
    num_blocks = p_rows // tile_rows

    # ---- hoisted masks (tiny, resident; no iota/mod inside the kernel) ------
    count_h = c * (h - 1) * w       # == tensor_size(x[:, :, 1:, :])
    count_w = c * h * (w - 1)       # == tensor_size(x[:, :, :, 1:])
    ratio = (count_h / count_w) if count_w > 0 else 0.0
    lane = jnp.arange(lanes, dtype=jnp.int32)
    wm = jnp.where((lane % w) != (w - 1),
                   jnp.float32(ratio), jnp.float32(0.0)).reshape(1, lanes)
    sel = (lane < (pack_k - 1) * w).astype(jnp.float32).reshape(1, lanes)
    row = jnp.arange(p_rows, dtype=jnp.int32)
    sub = jnp.where(((row + 1) % rows_per_img == 0) | ((row + 1) % tile_rows == 0),
                    jnp.float32(0.0), jnp.float32(1.0)).reshape(p_rows, 1)

    kernel = functools.partial(_tv_kernel, img_w=w, pack_k=pack_k,
                               rows_per_img=rows_per_img)

    vmem_need = tile_rows * per_row_vmem + (2 << 20)
    vmem_ceiling = max(32 << 20, vmem_cap - (8 << 20))
    vmem_limit = int(min(max(vmem_need, 32 << 20), vmem_ceiling))

    part = pl.pallas_call(
        kernel,
        grid=(num_blocks,),
        in_specs=[
            pl.BlockSpec((tile_rows, lanes), lambda i: (i, 0)),
            pl.BlockSpec((1, lanes), lambda i: (0, 0)),
            pl.BlockSpec((1, lanes), lambda i: (0, 0)),
            pl.BlockSpec((tile_rows, 1), lambda i: (i, 0)),
        ],
        out_specs=pl.BlockSpec((1, 1), lambda i: (i, 0), memory_space=pltpu.SMEM),
        out_shape=jax.ShapeDtypeStruct((num_blocks, 1), jnp.float32),
        compiler_params=pltpu.CompilerParams(
            dimension_semantics=("parallel",),
            vmem_limit_bytes=vmem_limit),
    )(a, wm, sel, sub)

    total = jnp.sum(part)

    # Vertical diffs across block seams that split an image were masked in the
    # kernel; add them back here (2 rows of HBM re-read per seam, pure JAX).
    if rows_per_img > 1:
        seam_rows = [r for r in range(tile_rows - 1, p_rows - 1, tile_rows)
                     if (r + 1) % rows_per_img != 0]
        if seam_rows:
            ridx = jnp.asarray(seam_rows, dtype=jnp.int32)
            top = a[ridx][:, (pack_k - 1) * w:].astype(jnp.float32)
            bot = a[ridx + 1][:, :w].astype(jnp.float32)
            d = bot - top
            total = total + jnp.sum(d * d)

    # total = h_tv + w_tv * (count_h / count_w)  ->  normalize by count_h once.
    return jnp.float32(tv_loss_weight) * 2.0 * total / (count_h * n)


if __name__ == "__main__":
    key = jax.random.PRNGKey(0)
    x = jax.random.normal(key, (2, 4, 16, 16), dtype=jnp.float32)

    out = tv_loss(x)
    jax.block_until_ready(out)

    # pure-JAX reference
    def ref(x, wgt=2e-08):
        n, c, h, w = x.shape
        h_tv = jnp.sum((x[:, :, 1:, :] - x[:, :, :-1, :]) ** 2)
        w_tv = jnp.sum((x[:, :, :, 1:] - x[:, :, :, :-1]) ** 2)
        count_h = c * (h - 1) * w
        count_w = c * h * (w - 1)
        return wgt * 2.0 * (h_tv / count_h + w_tv / count_w) / n

    expected = ref(x)
    assert jnp.allclose(out, expected, rtol=1e-4, atol=1e-12), (out, expected)

    # Also exercise the multi-block / H-tiled (seam-corrected) path.
    x2 = jax.random.normal(jax.random.PRNGKey(1), (1, 1, 256, 256),
                           dtype=jnp.float32)
    out2 = tv_loss(x2, target_block_bytes=64 * 1024)
    jax.block_until_ready(out2)
    expected2 = ref(x2)
    assert jnp.allclose(out2, expected2, rtol=1e-4, atol=1e-12), (out2, expected2)

    print("KERNEL_OK")
</pallas_src>

<mosaic_0001>
module attributes {stable_mosaic.version = 11 : i64} {
  func.func @_tv_kernel(%arg0: i32, %arg1: memref<8x256xf32, #tpu.memory_space<vmem>>, %arg2: memref<1x256xf32, #tpu.memory_space<vmem>>, %arg3: memref<1x256xf32, #tpu.memory_space<vmem>>, %arg4: memref<8x1xf32, #tpu.memory_space<vmem>>, %arg5: memref<1x1xf32, #tpu.memory_space<smem>>) attributes {dimension_semantics = [#tpu.dimension_semantics<parallel>], iteration_bounds = array<i64: 1>, scalar_prefetch = 0 : i64, scratch_operands = 0 : i64, tpu.core_type = #tpu.core_type<tc>, window_params = [{transform_indices = @transform_0, window_bounds = array<i64: 8, 256>}, {pipeline_mode = #tpu.pipeline_mode<synchronous>, transform_indices = @transform_1, window_bounds = array<i64: 1, 256>}, {pipeline_mode = #tpu.pipeline_mode<synchronous>, transform_indices = @transform_2, window_bounds = array<i64: 1, 256>}, {transform_indices = @transform_3, window_bounds = array<i64: 8, 1>}, {transform_indices = @transform_4, window_bounds = array<i64: 1, 1>}]} {
    %c0 = arith.constant 0 : index
    %c0_0 = arith.constant 0 : index
    %0 = vector.load %arg1[%c0, %c0_0] : memref<8x256xf32, #tpu.memory_space<vmem>>, vector<8x256xf32>
    %c255_i32 = arith.constant 255 : i32
    %1 = tpu.dynamic_rotate %0 by %c255_i32 dim 1 : vector<8x256xf32>, i32 -> vector<8x256xf32>
    %2 = arith.subf %1, %0 : vector<8x256xf32>
    %3 = arith.mulf %2, %2 : vector<8x256xf32>
    %c0_1 = arith.constant 0 : index
    %c0_2 = arith.constant 0 : index
    %4 = vector.load %arg2[%c0_1, %c0_2] : memref<1x256xf32, #tpu.memory_space<vmem>>, vector<1x256xf32>
    %5 = vector.broadcast %4 : vector<1x256xf32> to vector<8x256xf32>
    %6 = arith.mulf %3, %5 : vector<8x256xf32>
    %c240_i32 = arith.constant 240 : i32
    %7 = tpu.dynamic_rotate %0 by %c240_i32 dim 1 : vector<8x256xf32>, i32 -> vector<8x256xf32>
    %8 = arith.subf %7, %0 : vector<8x256xf32>
    %c0_3 = arith.constant 0 : index
    %c0_4 = arith.constant 0 : index
    %9 = vector.load %arg3[%c0_3, %c0_4] : memref<1x256xf32, #tpu.memory_space<vmem>>, vector<1x256xf32>
    %cst = arith.constant 0.000000e+00 : f32
    %10 = vector.broadcast %cst : f32 to vector<1x256xf32>
    %11 = arith.cmpf one, %9, %10 : vector<1x256xf32>
    %cst_5 = arith.constant 0.000000e+00 : f32
    %12 = vector.shape_cast %11 : vector<1x256xi1> to vector<1x256xi1>
    %13 = vector.broadcast %12 : vector<1x256xi1> to vector<8x256xi1>
    %14 = vector.broadcast %cst_5 : f32 to vector<8x256xf32>
    %15 = arith.select %13, %8, %14 : vector<8x256xi1>, vector<8x256xf32>
    %16 = arith.mulf %15, %15 : vector<8x256xf32>
    %17 = arith.addf %6, %16 : vector<8x256xf32>
    %18 = vector.shape_cast %17 : vector<8x256xf32> to vector<1x8x256xf32>
    %cst_6 = arith.constant dense<0.000000e+00> : vector<1xf32>
    %19 = vector.multi_reduction <add>, %18, %cst_6 [1, 2] : vector<1x8x256xf32> to vector<1xf32>
    %20 = vector.shape_cast %19 : vector<1xf32> to vector<1x1x1xf32>
    %21 = vector.extract %20[0, 0, 0] : f32 from vector<1x1x1xf32>
    %c0_7 = arith.constant 0 : index
    %c0_8 = arith.constant 0 : index
    %22 = memref.load %arg5[%c0_7, %c0_8] : memref<1x1xf32, #tpu.memory_space<smem>>
    memref.store %21, %arg5[%c0_7, %c0_8] : memref<1x1xf32, #tpu.memory_space<smem>>
    return
  }
  func.func @transform_0(%arg0: i32) -> (i32, i32) {
    %c0_i32 = arith.constant 0 : i32
    %c0_i32_0 = arith.constant 0 : i32
    return %arg0, %c0_i32 : i32, i32
  }
  func.func @transform_1(%arg0: i32) -> (i32, i32) {
    %c0_i32 = arith.constant 0 : i32
    %c0_i32_0 = arith.constant 0 : i32
    %c0_i32_1 = arith.constant 0 : i32
    return %c0_i32, %c0_i32_0 : i32, i32
  }
  func.func @transform_2(%arg0: i32) -> (i32, i32) {
    %c0_i32 = arith.constant 0 : i32
    %c0_i32_0 = arith.constant 0 : i32
    %c0_i32_1 = arith.constant 0 : i32
    return %c0_i32, %c0_i32_0 : i32, i32
  }
  func.func @transform_3(%arg0: i32) -> (i32, i32) {
    %c0_i32 = arith.constant 0 : i32
    %c0_i32_0 = arith.constant 0 : i32
    return %arg0, %c0_i32 : i32, i32
  }
  func.func @transform_4(%arg0: i32) -> (i32, i32) {
    %c0_i32 = arith.constant 0 : i32
    %c0_i32_0 = arith.constant 0 : i32
    return %arg0, %c0_i32 : i32, i32
  }
}

</mosaic_0001>

<bundles_post_ra>
// kernel: tpu_custom_call.1
= control target key start
LH: loop header
LB: loop body
LE: loop exit
PB: predicated region body
PF: predicated region fallthrough
CT: control target
= control target key end

     0   :  { %9 = vsyncpa [#allocation3], 0  ;;  %s194_s0 = inlined_call_operand.hbm [shape: f32[8,256], index: 0, kind: input, shape index: {}]   ;;  %s195_s1 = inlined_call_operand.vmem [shape: f32[1,256], index: 1, kind: input, shape index: {}]   ;;  %s196_s2 = inlined_call_operand.vmem [shape: f32[1,256], index: 2, kind: input, shape index: {}]   ;;  %s197_s3 = inlined_call_operand.vmem [shape: f32[8,1], index: 3, kind: input, shape index: {}]   ;;  %s198_s4 = inlined_call_operand.hbm [shape: f32[1,1], index: 4, kind: output, shape index: {}]  }
   0x1   :  { %10 = vsyncpa [#allocation4], 0  ;;  %s152_s15 = smov [#allocation2]  }
   0x2   :  { %s17_s16 = sshll.u32 %s152_s15, 4  ;;  %s18_s16 = int_to_ptr.vmem [resolvable:$true] %s17_s16 }
   0x3   :  { %s128_s17 = scalar_lea.vmem %s18_s16, 256  ;;  %p133_p1 = scmp.lt.s32.totalorder %s18_s16, %s18_s16 }
   0x4   :  { %p129_p0 = scmp.ne.s32.totalorder %s18_s16, %s128_s17  ;;  %p134_p2 = scmp.lt.s32.totalorder %s128_s17, %s128_s17 }
   0x6   :  { %p135_p3 = por %p134_p2, %p133_p1 }
   0x8   :  { %p136_p4 = pnand %p135_p3, %p129_p0 }
   0xa   :  { %139 = shalt.err (!%p136_p4)
}
   0xb   :  { %20 = dma.hbm_to_vmem [thread:$0]  %s194_s0, 256, %s18_s16, [#allocation3]  }
   0xc   :  { %148 = dma.done.wait [#allocation3], 256  }
   0xd   :  { %149 = vsyncadd [#allocation3], 4294967040  ;;  %v30_v0 = vld [vmem:[#allocation2] sm:$0xff]  ;;  %s153_s3 = smov 112   ;;  %s154_s20 = smov 127   ;;  %v31_v1 = vld [vmem:[#allocation2 + $0x8] sm:$0xff]  ;;  %v36_v2 = vlaneseq }
   0xe   :  { %59 = vrot.lane.b32.xlu1 %v30_v0, %s153_s3  ;;  %32 = vrot.lane.b32.xlu0 %v30_v0, %s154_s20  ;;  %v68_v3 = vld [vmem:[%s196_s2] sm:$0x3]  ;;  %v155_v7 = vmov 0   ;;  %s156_s2 = smov [#allocation5]  }
   0xf   :  { %v48_v4 = vshrl.u32 %v36_v2, 7  ;;  %vm69_vm0 = vcmp.ne.f32.partialorder %v68_v3, 0.0  ;;  %v37_v9 = vand.u32 127, %v36_v2  ;;  %v45_v14 = vld [vmem:[%s195_s1] sm:$0x3] }
  0x10   :  { %v70_v8 = vsel %vm69_vm0, 1, %v155_v7 }
  0x11   :  { %v49_v5 = vsub.s32 0, %v48_v4  ;;  %v53_v6 = vsub.s32 1, %v48_v4  ;;  %vm63_vm1 = vcmp.lt.s32.totalorder %v37_v9, 112  ;;  %vm38_vm2 = vcmp.lt.s32.totalorder %v37_v9, 127 }
  0x12   :  { %61 = vrot.lane.b32.xlu1 %v31_v1, %s153_s3  ;;  %34 = vrot.lane.b32.xlu0 %v31_v1, %s154_s20 }
  0x13   :  { %v74_v12 = vrot.slane %v70_v8, %v49_v5  ;;  %v78_v13 = vrot.slane %v70_v8, %v53_v6  ;;  %v50_v16 = vrot.slane %v45_v14, %v49_v5  ;;  %v54_v17 = vrot.slane %v45_v14, %v53_v6 }
  0x15   :  { %vm79_vm3 = vcmp.eq.s32.totalorder %v74_v12, 1  ;;  %vm80_vm4 = vcmp.eq.s32.totalorder %v78_v13, 1 }
  0x80   :  { %v60_v10 = vpop.permute.xlu1 %59  ;;  %v33_v11 = vpop.permute.xlu0 %32 }
  0x84   :  { %v62_v15 = vpop.permute.xlu1 %61  ;;  %v35_v18 = vpop.permute.xlu0 %34 }
  0x85   :  { %v64_v19 = vsel %vm63_vm1, %v60_v10, %v62_v15  ;;  %v65_v20 = vsel %vm63_vm1, %v62_v15, %v60_v10  ;;  %v39_v21 = vsel %vm38_vm2, %v33_v11, %v35_v18  ;;  %v40_v22 = vsel %vm38_vm2, %v35_v18, %v33_v11 }
  0x86   :  { %v66_v23 = vsub.f32 %v64_v19, %v30_v0  ;;  %v67_v24 = vsub.f32 %v65_v20, %v31_v1  ;;  %v41_v25 = vsub.f32 %v39_v21, %v30_v0  ;;  %v42_v26 = vsub.f32 %v40_v22, %v31_v1 }
  0x88   :  { %v81_v27 = vsel %vm79_vm3, %v66_v23, 0.0  ;;  %v82_v28 = vsel %vm80_vm4, %v67_v24, 0.0  ;;  %v43_v29 = vmul.f32 %v41_v25, %v41_v25  ;;  %v44_v30 = vmul.f32 %v42_v26, %v42_v26 }
  0x89   :  { %v83_v31 = vmul.f32 %v81_v27, %v81_v27  ;;  %v84_v32 = vmul.f32 %v82_v28, %v82_v28 }
  0x8a   :  { %v57_v33 = vmul.f32 %v50_v16, %v43_v29  ;;  %v58_v34 = vmul.f32 %v54_v17, %v44_v30 }
  0x8c   :  { %v85_v35 = vadd.f32 %v83_v31, %v57_v33  ;;  %v86_v36 = vadd.f32 %v84_v32, %v58_v34 }
  0x8e   :  { %v87_v37 = vadd.f32 %v86_v36, %v85_v35 }
  0x90   :  { %88 = vadd.xlane.f32.xlu0 %v87_v37 }
 0x119   :  { %v89_v38 = vpop.xlane.xlu0 %88 }
 0x11a   :  { %v90_v39 = vrot.slane %v89_v38, 4 }
 0x11c   :  { %v91_v40 = vadd.f32 %v90_v39, %v89_v38 }
 0x11e   :  { %v92_v41 = vrot.slane %v91_v40, 2 }
 0x120   :  { %v93_v42 = vadd.f32 %v92_v41, %v91_v40 }
 0x122   :  { %v94_v43 = vrot.slane %v93_v42, 1 }
 0x124   :  { %v95_v44 = vadd.f32 %v94_v43, %v93_v42 }
 0x126   :  { %113 = vpush %v95_v44 }
 0x157   :  { %s114_s1 = spop %113 }
 0x158   :  { %98 = sst [smem:[#allocation5]] %s114_s1 }
 0x159   :  { %106 = dma.smem_to_hbm %s156_s2, 16, %s198_s4, [#allocation4]  }
 0x15a   :  { %150 = dma.done.wait [#allocation4], 16  }
 0x15b   :  { %151 = vsyncadd [#allocation4], 4294967280 }
 0x15c   :  { %110 = sfence }
 0x15d   :  { %111 = vsyncpa [#allocation3], 1 }
 0x15e   :  { %112 = vsyncpa [#allocation4], 1 }

</bundles_post_ra>
